<compile_context>
chip_gen: v7x
topology: tpu7x:2x2x1
jax: 0.10.0
libtpu: 0.0.40
codegen_flags: <defaults>
</compile_context>

<pallas_src>
import jax
import jax.numpy as jnp
from jax.experimental import pallas as pl
from jax.experimental.pallas import tpu as pltpu

BN_EPS = 1e-5


# --------------------------------------------------------------------------
# Kernel
# --------------------------------------------------------------------------
def _bn_relu_train(h, gamma, beta):
    """Train-mode BatchNorm1d folded into one scale/shift, then ReLU.

    h: (B, E_pad) f32; gamma/beta: (1, E_pad) f32.  var = E[h^2] - mean^2
    (biased).  Padded lanes have gamma = beta = 0, so they stay exactly 0.
    """
    mean = jnp.mean(h, axis=0, keepdims=True)
    ex2 = jnp.mean(h * h, axis=0, keepdims=True)
    var = jnp.maximum(ex2 - mean * mean, 0.0)          # guard fp cancellation
    s = gamma * jax.lax.rsqrt(var + BN_EPS)            # EUP rsqrt, (1, E_pad)
    t = beta - mean * s                                # (1, E_pad)
    # s / t are broadcast across sublanes exactly once per layer here.
    return jnp.maximum(h * s + t, 0.0)


def mike_net_kernel(x1_ref, x2_ref, w1a_ref, w1b_ref, w2_ref, w3_ref,
                    vec_ref, o_ref):
    # vec_ref rows: 0:g1 1:be1 2:g2 3:be2 4:g3 5:be3 6:w4_row 7:b4(bcast)
    g1, be1 = vec_ref[0:1, :], vec_ref[1:2, :]
    g2, be2 = vec_ref[2:3, :], vec_ref[3:4, :]
    g3, be3 = vec_ref[4:5, :], vec_ref[5:6, :]
    w4_row = vec_ref[6:7, :]
    b4 = vec_ref[7:8, 0:1]                              # (1, 1)

    mm_dt = w1a_ref.dtype                               # f32 or bf16 (packed)

    # Layer 1: dot(x1, W1a^T) + dot(x2, W1b^T) -> BN1 -> ReLU.
    # (Linear biases are cancelled by train-mode BN mean subtraction.)
    h = (jnp.dot(x1_ref[...].astype(mm_dt), w1a_ref[...],
                 preferred_element_type=jnp.float32)
         + jnp.dot(x2_ref[...].astype(mm_dt), w1b_ref[...],
                   preferred_element_type=jnp.float32))
    h = _bn_relu_train(h, g1, be1)

    # Layer 2 -> BN2 -> ReLU.
    h = jnp.dot(h.astype(mm_dt), w2_ref[...],
                preferred_element_type=jnp.float32)
    h = _bn_relu_train(h, g2, be2)

    # Layer 3 -> BN3 -> ReLU.
    h = jnp.dot(h.astype(mm_dt), w3_ref[...],
                preferred_element_type=jnp.float32)
    h = _bn_relu_train(h, g3, be3)

    # Layer 4 (E_pad -> 1), lane-dense output: contract the feature axis of
    # both operands -> logits as a (1, B) row (batch on the lane axis).
    # Padded lanes of w4_row are 0 so padding never leaks into the reduce.
    logits = jax.lax.dot_general(
        w4_row, h, dimension_numbers=(((1,), (1,)), ((), ())),
        preferred_element_type=jnp.float32) + b4        # (1, B)
    o_ref[...] = jax.nn.sigmoid(logits).astype(o_ref.dtype)


# --------------------------------------------------------------------------
# One-time parameter packing (cache the result; do NOT repack per call)
# --------------------------------------------------------------------------
def select_matmul_dtype(batch, embedding_dim):
    """bf16 MXU operands only pay once the MXU is the binding unit.

    At small B / E (esp. v5e: (16,128) bf16 min tile, no bf16 VPU/EUP) the
    relayout and pack work dominates, so keep f32.
    """
    if batch >= 16 and embedding_dim >= 128:
        return jnp.bfloat16
    return jnp.float32


def pack_params(params, matmul_dtype=jnp.float32):
    """Transpose / pad / cast all weights once into kernel-ready layout.

    Feature dim is zero-padded to a multiple of 128 lanes.  Activations are
    NOT padded: layer-1 weights keep K = E and only pad the output columns;
    layers 2/3 pad both dims (their padded input lanes see zeros anyway).
    """
    E = params["w1a"].shape[0]
    E_pad = ((E + 127) // 128) * 128
    pad_c = E_pad - E

    def wt_out_pad(w):                                   # (E, E) -> (E, E_pad)
        return jnp.pad(jnp.transpose(w).astype(jnp.float32),
                       ((0, 0), (0, pad_c)))

    def wt_full_pad(w):                                  # (E, E) -> (E_pad, E_pad)
        return jnp.pad(jnp.transpose(w).astype(jnp.float32),
                       ((0, pad_c), (0, pad_c)))

    def row(v):                                          # (E,) -> (E_pad,)
        return jnp.pad(jnp.reshape(v, (-1,)).astype(jnp.float32), (0, pad_c))

    vec = jnp.stack(
        [
            row(params["g1"]), row(params["be1"]),
            row(params["g2"]), row(params["be2"]),
            row(params["g3"]), row(params["be3"]),
            row(params["w4"]),                               # W4 row, zero-padded
            jnp.full((E_pad,), params["b4"][0], jnp.float32),  # b4 broadcast
        ],
        axis=0,
    )                                                        # (8, E_pad) f32

    return dict(
        w1a=wt_out_pad(params["w1a"]).astype(matmul_dtype),   # (E,    E_pad)
        w1b=wt_out_pad(params["w1b"]).astype(matmul_dtype),   # (E,    E_pad)
        w2=wt_full_pad(params["w2"]).astype(matmul_dtype),    # (E_pad, E_pad)
        w3=wt_full_pad(params["w3"]).astype(matmul_dtype),    # (E_pad, E_pad)
        vec=vec,
    )


# --------------------------------------------------------------------------
# Forward (per-call wrapper: no weight repacking, no activation concat)
# --------------------------------------------------------------------------
@jax.jit
def mike_net_dnn_forward(x1, x2, packed):
    B, E = x1.shape
    E_pad = packed["w2"].shape[0]

    args = (x1.astype(jnp.float32), x2.astype(jnp.float32),
            packed["w1a"], packed["w1b"], packed["w2"], packed["w3"],
            packed["vec"])

    operand_bytes = sum(int(a.size) * a.dtype.itemsize for a in args) + B * 4
    # Generation-safe scoped-VMEM headroom (<= 48 MiB keeps v7x's 64 MiB OK).
    vmem_limit = int(min(48 * 1024 * 1024,
                         max(16 * 1024 * 1024, 4 * operand_bytes)))

    flops = (2 * B * E * E_pad * 2          # layer 1 (two dots, K = E)
             + 2 * 2 * B * E_pad * E_pad    # layers 2 & 3
             + 2 * B * E_pad)               # layer 4 reduction
    cost = pl.CostEstimate(flops=flops,
                           transcendentals=3 * E_pad + B,   # rsqrt x3, sigmoid
                           bytes_accessed=operand_bytes + B * 4)

    vmem_spec = pl.BlockSpec(memory_space=pltpu.MemorySpace.VMEM)
    out = pl.pallas_call(
        mike_net_kernel,
        out_shape=jax.ShapeDtypeStruct((1, B), jnp.float32),   # lane-dense
        in_specs=[vmem_spec] * len(args),
        out_specs=vmem_spec,
        compiler_params=pltpu.CompilerParams(vmem_limit_bytes=vmem_limit),
        cost_estimate=cost,
    )(*args)
    return jnp.reshape(out, (B, 1))


# --------------------------------------------------------------------------
# Reference, init, demo
# --------------------------------------------------------------------------
def mike_net_reference(x1, x2, params):
    """Pure-JAX reference with full PyTorch semantics (incl. the biases that
    the kernel drops — they must cancel through train-mode BN)."""
    def bn(h, g, b):
        mean = jnp.mean(h, axis=0, keepdims=True)
        var = jnp.mean((h - mean) ** 2, axis=0, keepdims=True)
        return (h - mean) * jax.lax.rsqrt(var + BN_EPS) * g + b

    h = (x1 @ params["w1a"].T + params["b1a"]
         + x2 @ params["w1b"].T + params["b1b"])
    h = jnp.maximum(bn(h, params["g1"], params["be1"]), 0.0)
    h = h @ params["w2"].T + params["b2"]
    h = jnp.maximum(bn(h, params["g2"], params["be2"]), 0.0)
    h = h @ params["w3"].T + params["b3"]
    h = jnp.maximum(bn(h, params["g3"], params["be3"]), 0.0)
    logits = h @ params["w4"].T + params["b4"]
    return jax.nn.sigmoid(logits)


def init_params(key, embedding_dim):
    """Deterministic init mimicking PyTorch defaults (uniform +-1/sqrt(fan_in))."""
    E = embedding_dim
    keys = jax.random.split(key, 10)

    def lin(k, out_dim, in_dim):
        kw, kb = jax.random.split(k)
        bound = 1.0 / jnp.sqrt(in_dim)
        w = jax.random.uniform(kw, (out_dim, in_dim), jnp.float32, -bound, bound)
        b = jax.random.uniform(kb, (out_dim,), jnp.float32, -bound, bound)
        return w, b

    w1a, b1a = lin(keys[0], E, E)
    w1b, b1b = lin(keys[1], E, E)
    w2, b2 = lin(keys[2], E, E)
    w3, b3 = lin(keys[3], E, E)
    w4, b4 = lin(keys[4], 1, E)

    return dict(
        w1a=w1a, b1a=b1a, w1b=w1b, b1b=b1b,   # b1a/b1b/b2/b3 kept for parity,
        w2=w2, b2=b2, w3=w3, b3=b3,           # but cancelled by train-mode BN
        w4=w4, b4=b4,
        g1=jnp.ones((E,), jnp.float32), be1=jnp.zeros((E,), jnp.float32),
        g2=jnp.ones((E,), jnp.float32), be2=jnp.zeros((E,), jnp.float32),
        g3=jnp.ones((E,), jnp.float32), be3=jnp.zeros((E,), jnp.float32),
    )


if __name__ == "__main__":
    B, E = 8, 32  # batch, embedding_dim

    key = jax.random.PRNGKey(0)
    k_x1, k_x2, k_p = jax.random.split(key, 3)
    x1 = jax.random.normal(k_x1, (B, E), jnp.float32)
    x2 = jax.random.normal(k_x2, (B, E), jnp.float32)
    params = init_params(k_p, E)

    # One-time packing; the resulting pytree is cached/reused across calls.
    mm_dt = select_matmul_dtype(B, E)           # f32 at these shapes
    packed = pack_params(params, matmul_dtype=mm_dt)

    out = mike_net_dnn_forward(x1, x2, packed)
    jax.block_until_ready(out)

    ref = mike_net_reference(x1, x2, params)

    assert out.shape == (B, 1)
    assert bool(jnp.all(jnp.isfinite(out)))
    assert bool(jnp.all((out >= 0.0) & (out <= 1.0)))
    assert bool(jnp.allclose(out, ref, atol=1e-2)), "mismatch vs. reference"
    print("KERNEL_OK")
</pallas_src>

<mosaic_0001>
module attributes {stable_mosaic.version = 11 : i64} {
  func.func @mike_net_kernel(%arg0: memref<8x32xf32, #tpu.memory_space<vmem>>, %arg1: memref<8x32xf32, #tpu.memory_space<vmem>>, %arg2: memref<32x128xf32, #tpu.memory_space<vmem>>, %arg3: memref<32x128xf32, #tpu.memory_space<vmem>>, %arg4: memref<128x128xf32, #tpu.memory_space<vmem>>, %arg5: memref<128x128xf32, #tpu.memory_space<vmem>>, %arg6: memref<8x128xf32, #tpu.memory_space<vmem>>, %arg7: memref<1x8xf32, #tpu.memory_space<vmem>>) attributes {dimension_semantics = [], scalar_prefetch = 0 : i64, scratch_operands = 0 : i64, tpu.core_type = #tpu.core_type<tc>} {
    %c0 = arith.constant 0 : index
    %c0_0 = arith.constant 0 : index
    %0 = vector.load %arg6[%c0, %c0_0] : memref<8x128xf32, #tpu.memory_space<vmem>>, vector<1x128xf32>
    %c1 = arith.constant 1 : index
    %c0_1 = arith.constant 0 : index
    %1 = vector.load %arg6[%c1, %c0_1] : memref<8x128xf32, #tpu.memory_space<vmem>>, vector<1x128xf32>
    %c2 = arith.constant 2 : index
    %c0_2 = arith.constant 0 : index
    %2 = vector.load %arg6[%c2, %c0_2] : memref<8x128xf32, #tpu.memory_space<vmem>>, vector<1x128xf32>
    %c3 = arith.constant 3 : index
    %c0_3 = arith.constant 0 : index
    %3 = vector.load %arg6[%c3, %c0_3] : memref<8x128xf32, #tpu.memory_space<vmem>>, vector<1x128xf32>
    %c4 = arith.constant 4 : index
    %c0_4 = arith.constant 0 : index
    %4 = vector.load %arg6[%c4, %c0_4] : memref<8x128xf32, #tpu.memory_space<vmem>>, vector<1x128xf32>
    %c5 = arith.constant 5 : index
    %c0_5 = arith.constant 0 : index
    %5 = vector.load %arg6[%c5, %c0_5] : memref<8x128xf32, #tpu.memory_space<vmem>>, vector<1x128xf32>
    %c6 = arith.constant 6 : index
    %c0_6 = arith.constant 0 : index
    %6 = vector.load %arg6[%c6, %c0_6] : memref<8x128xf32, #tpu.memory_space<vmem>>, vector<1x128xf32>
    %c7 = arith.constant 7 : index
    %c0_7 = arith.constant 0 : index
    %7 = vector.load %arg6[%c7, %c0_7] : memref<8x128xf32, #tpu.memory_space<vmem>>, vector<1x1xf32>
    %c0_8 = arith.constant 0 : index
    %c0_9 = arith.constant 0 : index
    %8 = vector.load %arg0[%c0_8, %c0_9] : memref<8x32xf32, #tpu.memory_space<vmem>>, vector<8x32xf32>
    %c0_10 = arith.constant 0 : index
    %c0_11 = arith.constant 0 : index
    %9 = vector.load %arg2[%c0_10, %c0_11] : memref<32x128xf32, #tpu.memory_space<vmem>>, vector<32x128xf32>
    %cst = arith.constant dense<0.000000e+00> : vector<8x128xf32>
    %10 = tpu.matmul %8, %9, %cst {dimension_numbers = #tpu.dot_dimension_numbers<[1], [0], [0], [1], [0, 0, 1, 1], [], []>} : vector<8x32xf32>, vector<32x128xf32>, vector<8x128xf32> -> vector<8x128xf32>
    %c0_12 = arith.constant 0 : index
    %c0_13 = arith.constant 0 : index
    %11 = vector.load %arg1[%c0_12, %c0_13] : memref<8x32xf32, #tpu.memory_space<vmem>>, vector<8x32xf32>
    %c0_14 = arith.constant 0 : index
    %c0_15 = arith.constant 0 : index
    %12 = vector.load %arg3[%c0_14, %c0_15] : memref<32x128xf32, #tpu.memory_space<vmem>>, vector<32x128xf32>
    %cst_16 = arith.constant dense<0.000000e+00> : vector<8x128xf32>
    %13 = tpu.matmul %11, %12, %cst_16 {dimension_numbers = #tpu.dot_dimension_numbers<[1], [0], [0], [1], [0, 0, 1, 1], [], []>} : vector<8x32xf32>, vector<32x128xf32>, vector<8x128xf32> -> vector<8x128xf32>
    %14 = arith.addf %10, %13 : vector<8x128xf32>
    %cst_17 = arith.constant dense<0.000000e+00> : vector<128xf32>
    %15 = vector.multi_reduction <add>, %14, %cst_17 [0] : vector<8x128xf32> to vector<128xf32>
    %16 = vector.shape_cast %15 : vector<128xf32> to vector<1x128xf32>
    %cst_18 = arith.constant 8.000000e+00 : f32
    %17 = vector.broadcast %cst_18 : f32 to vector<1x128xf32>
    %18 = arith.divf %16, %17 : vector<1x128xf32>
    %19 = arith.mulf %14, %14 : vector<8x128xf32>
    %cst_19 = arith.constant dense<0.000000e+00> : vector<128xf32>
    %20 = vector.multi_reduction <add>, %19, %cst_19 [0] : vector<8x128xf32> to vector<128xf32>
    %21 = vector.shape_cast %20 : vector<128xf32> to vector<1x128xf32>
    %cst_20 = arith.constant 8.000000e+00 : f32
    %22 = vector.broadcast %cst_20 : f32 to vector<1x128xf32>
    %23 = arith.divf %21, %22 : vector<1x128xf32>
    %24 = arith.mulf %18, %18 : vector<1x128xf32>
    %25 = arith.subf %23, %24 : vector<1x128xf32>
    %cst_21 = arith.constant 0.000000e+00 : f32
    %26 = vector.broadcast %cst_21 : f32 to vector<1x128xf32>
    %27 = arith.maximumf %25, %26 : vector<1x128xf32>
    %cst_22 = arith.constant 9.99999974E-6 : f32
    %28 = vector.broadcast %cst_22 : f32 to vector<1x128xf32>
    %29 = arith.addf %27, %28 : vector<1x128xf32>
    %30 = math.rsqrt %29 : vector<1x128xf32>
    %31 = arith.mulf %0, %30 : vector<1x128xf32>
    %32 = arith.mulf %18, %31 : vector<1x128xf32>
    %33 = arith.subf %1, %32 : vector<1x128xf32>
    %34 = vector.broadcast %31 : vector<1x128xf32> to vector<8x128xf32>
    %35 = arith.mulf %14, %34 : vector<8x128xf32>
    %36 = vector.broadcast %33 : vector<1x128xf32> to vector<8x128xf32>
    %37 = arith.addf %35, %36 : vector<8x128xf32>
    %cst_23 = arith.constant 0.000000e+00 : f32
    %38 = vector.broadcast %cst_23 : f32 to vector<8x128xf32>
    %39 = arith.maximumf %37, %38 : vector<8x128xf32>
    %c0_24 = arith.constant 0 : index
    %c0_25 = arith.constant 0 : index
    %40 = vector.load %arg4[%c0_24, %c0_25] : memref<128x128xf32, #tpu.memory_space<vmem>>, vector<128x128xf32>
    %cst_26 = arith.constant dense<0.000000e+00> : vector<8x128xf32>
    %41 = tpu.matmul %39, %40, %cst_26 {dimension_numbers = #tpu.dot_dimension_numbers<[1], [0], [0], [1], [0, 0, 1, 1], [], []>} : vector<8x128xf32>, vector<128x128xf32>, vector<8x128xf32> -> vector<8x128xf32>
    %cst_27 = arith.constant dense<0.000000e+00> : vector<128xf32>
    %42 = vector.multi_reduction <add>, %41, %cst_27 [0] : vector<8x128xf32> to vector<128xf32>
    %43 = vector.shape_cast %42 : vector<128xf32> to vector<1x128xf32>
    %cst_28 = arith.constant 8.000000e+00 : f32
    %44 = vector.broadcast %cst_28 : f32 to vector<1x128xf32>
    %45 = arith.divf %43, %44 : vector<1x128xf32>
    %46 = arith.mulf %41, %41 : vector<8x128xf32>
    %cst_29 = arith.constant dense<0.000000e+00> : vector<128xf32>
    %47 = vector.multi_reduction <add>, %46, %cst_29 [0] : vector<8x128xf32> to vector<128xf32>
    %48 = vector.shape_cast %47 : vector<128xf32> to vector<1x128xf32>
    %cst_30 = arith.constant 8.000000e+00 : f32
    %49 = vector.broadcast %cst_30 : f32 to vector<1x128xf32>
    %50 = arith.divf %48, %49 : vector<1x128xf32>
    %51 = arith.mulf %45, %45 : vector<1x128xf32>
    %52 = arith.subf %50, %51 : vector<1x128xf32>
    %cst_31 = arith.constant 0.000000e+00 : f32
    %53 = vector.broadcast %cst_31 : f32 to vector<1x128xf32>
    %54 = arith.maximumf %52, %53 : vector<1x128xf32>
    %cst_32 = arith.constant 9.99999974E-6 : f32
    %55 = vector.broadcast %cst_32 : f32 to vector<1x128xf32>
    %56 = arith.addf %54, %55 : vector<1x128xf32>
    %57 = math.rsqrt %56 : vector<1x128xf32>
    %58 = arith.mulf %2, %57 : vector<1x128xf32>
    %59 = arith.mulf %45, %58 : vector<1x128xf32>
    %60 = arith.subf %3, %59 : vector<1x128xf32>
    %61 = vector.broadcast %58 : vector<1x128xf32> to vector<8x128xf32>
    %62 = arith.mulf %41, %61 : vector<8x128xf32>
    %63 = vector.broadcast %60 : vector<1x128xf32> to vector<8x128xf32>
    %64 = arith.addf %62, %63 : vector<8x128xf32>
    %cst_33 = arith.constant 0.000000e+00 : f32
    %65 = vector.broadcast %cst_33 : f32 to vector<8x128xf32>
    %66 = arith.maximumf %64, %65 : vector<8x128xf32>
    %c0_34 = arith.constant 0 : index
    %c0_35 = arith.constant 0 : index
    %67 = vector.load %arg5[%c0_34, %c0_35] : memref<128x128xf32, #tpu.memory_space<vmem>>, vector<128x128xf32>
    %cst_36 = arith.constant dense<0.000000e+00> : vector<8x128xf32>
    %68 = tpu.matmul %66, %67, %cst_36 {dimension_numbers = #tpu.dot_dimension_numbers<[1], [0], [0], [1], [0, 0, 1, 1], [], []>} : vector<8x128xf32>, vector<128x128xf32>, vector<8x128xf32> -> vector<8x128xf32>
    %cst_37 = arith.constant dense<0.000000e+00> : vector<128xf32>
    %69 = vector.multi_reduction <add>, %68, %cst_37 [0] : vector<8x128xf32> to vector<128xf32>
    %70 = vector.shape_cast %69 : vector<128xf32> to vector<1x128xf32>
    %cst_38 = arith.constant 8.000000e+00 : f32
    %71 = vector.broadcast %cst_38 : f32 to vector<1x128xf32>
    %72 = arith.divf %70, %71 : vector<1x128xf32>
    %73 = arith.mulf %68, %68 : vector<8x128xf32>
    %cst_39 = arith.constant dense<0.000000e+00> : vector<128xf32>
    %74 = vector.multi_reduction <add>, %73, %cst_39 [0] : vector<8x128xf32> to vector<128xf32>
    %75 = vector.shape_cast %74 : vector<128xf32> to vector<1x128xf32>
    %cst_40 = arith.constant 8.000000e+00 : f32
    %76 = vector.broadcast %cst_40 : f32 to vector<1x128xf32>
    %77 = arith.divf %75, %76 : vector<1x128xf32>
    %78 = arith.mulf %72, %72 : vector<1x128xf32>
    %79 = arith.subf %77, %78 : vector<1x128xf32>
    %cst_41 = arith.constant 0.000000e+00 : f32
    %80 = vector.broadcast %cst_41 : f32 to vector<1x128xf32>
    %81 = arith.maximumf %79, %80 : vector<1x128xf32>
    %cst_42 = arith.constant 9.99999974E-6 : f32
    %82 = vector.broadcast %cst_42 : f32 to vector<1x128xf32>
    %83 = arith.addf %81, %82 : vector<1x128xf32>
    %84 = math.rsqrt %83 : vector<1x128xf32>
    %85 = arith.mulf %4, %84 : vector<1x128xf32>
    %86 = arith.mulf %72, %85 : vector<1x128xf32>
    %87 = arith.subf %5, %86 : vector<1x128xf32>
    %88 = vector.broadcast %85 : vector<1x128xf32> to vector<8x128xf32>
    %89 = arith.mulf %68, %88 : vector<8x128xf32>
    %90 = vector.broadcast %87 : vector<1x128xf32> to vector<8x128xf32>
    %91 = arith.addf %89, %90 : vector<8x128xf32>
    %cst_43 = arith.constant 0.000000e+00 : f32
    %92 = vector.broadcast %cst_43 : f32 to vector<8x128xf32>
    %93 = arith.maximumf %91, %92 : vector<8x128xf32>
    %cst_44 = arith.constant dense<0.000000e+00> : vector<1x8xf32>
    %94 = tpu.matmul %6, %93, %cst_44 {dimension_numbers = #tpu.dot_dimension_numbers<[1], [1], [0], [0], [0, 0, 1, 0], [], []>} : vector<1x128xf32>, vector<8x128xf32>, vector<1x8xf32> -> vector<1x8xf32>
    %95 = vector.broadcast %7 : vector<1x1xf32> to vector<1x8xf32>
    %96 = arith.addf %94, %95 : vector<1x8xf32>
    %97 = arith.negf %96 : vector<1x8xf32>
    %98 = math.exp %97 : vector<1x8xf32>
    %cst_45 = arith.constant 1.000000e+00 : f32
    %99 = vector.broadcast %cst_45 : f32 to vector<1x8xf32>
    %100 = arith.addf %99, %98 : vector<1x8xf32>
    %101 = arith.divf %99, %100 : vector<1x8xf32>
    %c0_46 = arith.constant 0 : index
    %c0_47 = arith.constant 0 : index
    %102 = vector.load %arg7[%c0_46, %c0_47] : memref<1x8xf32, #tpu.memory_space<vmem>>, vector<1x8xf32>
    tpu.vector_store %arg7[%c0_46, %c0_47], %101 {strides = array<i32>} : memref<1x8xf32, #tpu.memory_space<vmem>>, vector<1x8xf32>,
    return
  }
}

</mosaic_0001>

<bundles_post_ra>
// kernel: mike_net_dnn_forward.1
= control target key start
LH: loop header
LB: loop body
LE: loop exit
PB: predicated region body
PF: predicated region fallthrough
CT: control target
= control target key end

     0   :  { %12 = vsyncpa [#allocation3], 0  ;;  %s1276_s0 = inlined_call_operand.hbm [shape: f32[8,32], index: 0, kind: input, shape index: {}]   ;;  %s1277_s1 = inlined_call_operand.hbm [shape: f32[8,32], index: 1, kind: input, shape index: {}]   ;;  %s1278_s2 = inlined_call_operand.hbm [shape: f32[32,128], index: 2, kind: input, shape index: {}]   ;;  %s1279_s3 = inlined_call_operand.hbm [shape: f32[32,128], index: 3, kind: input, shape index: {}]   ;;  %s1280_s4 = inlined_call_operand.hbm [shape: f32[128,128], index: 4, kind: input, shape index: {}]   ;;  %s1281_s5 = inlined_call_operand.hbm [shape: f32[128,128], index: 5, kind: input, shape index: {}]   ;;  %s1282_s6 = inlined_call_operand.hbm [shape: f32[8,128], index: 6, kind: input, shape index: {}]   ;;  %s1283_s7 = inlined_call_operand.hbm [shape: f32[1,8], index: 7, kind: output, shape index: {}]  }
   0x1   :  { %13 = vsyncpa [#allocation6], 0 }
   0x2   :  { %14 = vsyncpa [#allocation9], 0 }
   0x3   :  { %15 = vsyncpa [#allocation12], 0 }
   0x4   :  { %16 = vsyncpa [#allocation4], 0  ;;  %s1075_s24 = smov [#allocation5]   ;;  %s889_s28 = scalar_lea.hbm %s1277_s1, 128 }
   0x5   :  { %s33_s25 = sshll.u32 %s1075_s24, 4  ;;  %p890_p0 = scmp.ne.s32.totalorder %s1277_s1, %s889_s28  ;;  %s34_s25 = int_to_ptr.vmem [resolvable:$true] %s33_s25 }
   0x6   :  { %p893_p1 = scmp.lt.u32.totalorder %s889_s28, %s1277_s1 }
   0x8   :  { %p895_p2 = pnand %p893_p1, %p890_p0 }
   0xa   :  { %898 = shalt.err (!%p895_p2)
}
   0xb   :  { %s899_s10 = scalar_lea.vmem %s34_s25, 128  ;;  %p904_p4 = scmp.lt.s32.totalorder %s34_s25, %s34_s25 }
   0xc   :  { %p900_p3 = scmp.ne.s32.totalorder %s34_s25, %s899_s10  ;;  %p905_p5 = scmp.lt.s32.totalorder %s899_s10, %s899_s10 }
   0xe   :  { %p906_p6 = por %p905_p5, %p904_p4 }
  0x10   :  { %p907_p7 = pnand %p906_p6, %p900_p3 }
  0x12   :  { %910 = shalt.err (!%p907_p7)
}
  0x13   :  { %36 = dma.hbm_to_vmem [thread:$0]  %s1277_s1, 128, %s34_s25, [#allocation6]  }
  0x14   :  { %s1076_s13 = smov [#allocation8]   ;;  %s1077_s15 = smov [#allocation11]  }
  0x15   :  { %s54_s14 = sshll.u32 %s1076_s13, 4  ;;  %s78_s16 = sshll.u32 %s1077_s15, 4  ;;  %s55_s14 = int_to_ptr.vmem [resolvable:$true] %s54_s14  ;;  %s79_s16 = int_to_ptr.vmem [resolvable:$true] %s78_s16 }
  0x16   :  { %s911_s19 = scalar_lea.hbm %s1279_s3, 512 }
  0x17   :  { %p912_p8 = scmp.ne.s32.totalorder %s1279_s3, %s911_s19  ;;  %p915_p9 = scmp.lt.u32.totalorder %s911_s19, %s1279_s3 }
  0x19   :  { %p917_p10 = pnand %p915_p9, %p912_p8 }
  0x1b   :  { %920 = shalt.err (!%p917_p10)
}
  0x1c   :  { %s921_s1 = scalar_lea.vmem %s55_s14, 512  ;;  %p926_p12 = scmp.lt.s32.totalorder %s55_s14, %s55_s14 }
  0x1d   :  { %p922_p11 = scmp.ne.s32.totalorder %s55_s14, %s921_s1  ;;  %p927_p13 = scmp.lt.s32.totalorder %s921_s1, %s921_s1 }
  0x1f   :  { %p928_p0 = por %p927_p13, %p926_p12 }
  0x21   :  { %p929_p1 = pnand %p928_p0, %p922_p11 }
  0x23   :  { %932 = shalt.err (!%p929_p1)
}
  0x24   :  { %s1078_s24 = smov 128   ;;  %s1079_s25 = smov 8  }
  0x25   :  { %60 = dma.hbm_to_vmem [thread:$0]  %s1279_s3, 512, %s55_s14, [#allocation9], %s1078_s24, %s1078_s24, %s1079_s25  }
  0x26   :  { %s933_s30 = scalar_lea.hbm %s1281_s5, 2048 }
  0x27   :  { %p934_p2 = scmp.ne.s32.totalorder %s1281_s5, %s933_s30  ;;  %p937_p3 = scmp.lt.u32.totalorder %s933_s30, %s1281_s5 }
  0x29   :  { %p939_p4 = pnand %p937_p3, %p934_p2 }
  0x2b   :  { %942 = shalt.err (!%p939_p4)
}
  0x2c   :  { %s943_s12 = scalar_lea.vmem %s79_s16, 2048  ;;  %p948_p6 = scmp.lt.s32.totalorder %s79_s16, %s79_s16 }
  0x2d   :  { %p944_p5 = scmp.ne.s32.totalorder %s79_s16, %s943_s12  ;;  %p949_p7 = scmp.lt.s32.totalorder %s943_s12, %s943_s12 }
  0x2f   :  { %p950_p8 = por %p949_p7, %p948_p6 }
  0x31   :  { %p951_p9 = pnand %p950_p8, %p944_p5 }
  0x33   :  { %954 = shalt.err (!%p951_p9)
}
  0x34   :  { %84 = dma.hbm_to_vmem [thread:$0]  %s1281_s5, 2048, %s79_s16, [#allocation12], %s1078_s24, %s1078_s24, %s1079_s25  }
  0x35   :  { %s1080_s14 = smov [#allocation2]   ;;  %s1081_s17 = smov [#allocation7]  }
  0x36   :  { %s23_s15 = sshll.u32 %s1080_s14, 4  ;;  %s42_s18 = sshll.u32 %s1081_s17, 4  ;;  %s24_s15 = int_to_ptr.vmem [resolvable:$true] %s23_s15  ;;  %s43_s18 = int_to_ptr.vmem [resolvable:$true] %s42_s18 }
  0x37   :  { %s955_s21 = scalar_lea.hbm %s1276_s0, 128 }
  0x38   :  { %p956_p10 = scmp.ne.s32.totalorder %s1276_s0, %s955_s21  ;;  %p959_p11 = scmp.lt.u32.totalorder %s955_s21, %s1276_s0 }
  0x3a   :  { %p961_p12 = pnand %p959_p11, %p956_p10 }
  0x3c   :  { %964 = shalt.err (!%p961_p12)
}
  0x3d   :  { %s965_s5 = scalar_lea.vmem %s24_s15, 128  ;;  %p970_p0 = scmp.lt.s32.totalorder %s24_s15, %s24_s15 }
  0x3e   :  { %p966_p13 = scmp.ne.s32.totalorder %s24_s15, %s965_s5  ;;  %p971_p1 = scmp.lt.s32.totalorder %s965_s5, %s965_s5 }
  0x40   :  { %p972_p2 = por %p971_p1, %p970_p0 }
  0x42   :  { %p973_p3 = pnand %p972_p2, %p966_p13 }
  0x44   :  { %976 = shalt.err (!%p973_p3)
}
  0x45   :  { %26 = dma.hbm_to_vmem [thread:$0]  %s1276_s0, 128, %s24_s15, [#allocation3]  }
  0x46   :  { %s977_s30 = scalar_lea.hbm %s1278_s2, 512 }
  0x47   :  { %p978_p4 = scmp.ne.s32.totalorder %s1278_s2, %s977_s30  ;;  %p981_p5 = scmp.lt.u32.totalorder %s977_s30, %s1278_s2 }
  0x49   :  { %p983_p6 = pnand %p981_p5, %p978_p4 }
  0x4b   :  { %986 = shalt.err (!%p983_p6)
}
  0x4c   :  { %s987_s12 = scalar_lea.vmem %s43_s18, 512  ;;  %p992_p8 = scmp.lt.s32.totalorder %s43_s18, %s43_s18 }
  0x4d   :  { %p988_p7 = scmp.ne.s32.totalorder %s43_s18, %s987_s12  ;;  %p993_p9 = scmp.lt.s32.totalorder %s987_s12, %s987_s12 }
  0x4f   :  { %p994_p10 = por %p993_p9, %p992_p8 }
  0x51   :  { %p995_p11 = pnand %p994_p10, %p988_p7 }
  0x53   :  { %998 = shalt.err (!%p995_p11)
}
  0x54   :  { %48 = dma.hbm_to_vmem [thread:$0]  %s1278_s2, 512, %s43_s18, [#allocation6], %s1078_s24, %s1078_s24, %s1079_s25  }
  0x55   :  { %s1082_s13 = smov [#allocation10]   ;;  %s1083_s15 = smov [#allocation13]  }
  0x56   :  { %s66_s14 = sshll.u32 %s1082_s13, 4  ;;  %s91_s17 = sshll.u32 %s1083_s15, 4  ;;  %s67_s14 = int_to_ptr.vmem [resolvable:$true] %s66_s14  ;;  %s92_s17 = int_to_ptr.vmem [resolvable:$true] %s91_s17 }
  0x57   :  { %s999_s21 = scalar_lea.hbm %s1280_s4, 2048 }
  0x58   :  { %p1000_p12 = scmp.ne.s32.totalorder %s1280_s4, %s999_s21  ;;  %p1003_p13 = scmp.lt.u32.totalorder %s999_s21, %s1280_s4 }
  0x5a   :  { %p1005_p0 = pnand %p1003_p13, %p1000_p12 }
  0x5c   :  { %1008 = shalt.err (!%p1005_p0)
}
  0x5d   :  { %s1009_s2 = scalar_lea.vmem %s67_s14, 2048  ;;  %p1014_p2 = scmp.lt.s32.totalorder %s67_s14, %s67_s14 }
  0x5e   :  { %p1010_p1 = scmp.ne.s32.totalorder %s67_s14, %s1009_s2  ;;  %p1015_p3 = scmp.lt.s32.totalorder %s1009_s2, %s1009_s2 }
  0x60   :  { %p1016_p4 = por %p1015_p3, %p1014_p2 }
  0x62   :  { %p1017_p5 = pnand %p1016_p4, %p1010_p1 }
  0x64   :  { %1020 = shalt.err (!%p1017_p5)
}
  0x65   :  { %72 = dma.hbm_to_vmem [thread:$0]  %s1280_s4, 2048, %s67_s14, [#allocation9], %s1078_s24, %s1078_s24, %s1079_s25  }
  0x66   :  { %s1021_s28 = scalar_lea.hbm %s1282_s6, 128 }
  0x67   :  { %p1022_p6 = scmp.ne.s32.totalorder %s1282_s6, %s1021_s28  ;;  %p1025_p7 = scmp.lt.u32.totalorder %s1021_s28, %s1282_s6 }
  0x69   :  { %p1027_p8 = pnand %p1025_p7, %p1022_p6 }
  0x6b   :  { %1030 = shalt.err (!%p1027_p8)
}
  0x6c   :  { %s1031_s10 = scalar_lea.vmem %s92_s17, 128  ;;  %p1036_p10 = scmp.lt.s32.totalorder %s92_s17, %s92_s17 }
  0x6d   :  { %p1032_p9 = scmp.ne.s32.totalorder %s92_s17, %s1031_s10  ;;  %p1037_p11 = scmp.lt.s32.totalorder %s1031_s10, %s1031_s10 }
  0x6f   :  { %p1038_p12 = por %p1037_p11, %p1036_p10 }
  0x71   :  { %p1039_p13 = pnand %p1038_p12, %p1032_p9 }
  0x73   :  { %1042 = shalt.err (!%p1039_p13)
}
  0x74   :  { %94 = dma.hbm_to_vmem [thread:$0]  %s1282_s6, 128, %s92_s17, [#allocation12]  }
  0x75   :  { %1065 = dma.done.wait [#allocation3], 128  }
  0x76   :  { %1066 = vsyncadd [#allocation3], 4294967168 }
  0x77   :  { %1067 = dma.done.wait [#allocation6], 640  }
  0x78   :  { %1068 = vsyncadd [#allocation6], 4294966656 }
  0x79   :  { %1069 = dma.done.wait [#allocation9], 2560  }
  0x7a   :  { %1070 = vsyncadd [#allocation9], 4294964736 }
  0x7b   :  { %1071 = dma.done.wait [#allocation12], 2176  }
  0x7c   :  { %1072 = vsyncadd [#allocation12], 4294965120  ;;  %v1084_v0 = vmov 0.0|0.0   ;;  %vm1085_vm0 = vmmov 0   ;;  %v1086_v1 = vmov 0.0   ;;  %v130_v2 = vld [vmem:[#allocation8] sm:$0xff] }
  0x7d   :  { %803 = vmatprep.subr.bf16.mxu1 %v1084_v0  ;;  %809 = vmatprep.subr.bf16.mxu0 %v1084_v0  ;;  %v131_v3 = vld [vmem:[#allocation8 + $0x8] sm:$0xff]  ;;  %v125_v4 = vld [vmem:[#allocation7] sm:$0xff]  ;;  %v132_v7 = vld [vmem:[#allocation8 + $0x10] sm:$0xff]  ;;  %vm134_vm1 = vcmask 261120   ;;  %s1088_s6 = smov [#allocation14]   ;;  %vm637_vm2 = vcmask 57344  }
  0x7e   :  { %714 = vmatprep.mubr.msk.f32.mxu1 %vm1085_vm0, %v1086_v1  ;;  %725 = vmatprep.mubr.msk.f32.mxu0 %vm1085_vm0, %v1086_v1  ;;  %v804_v5 = vpack.c.bf16 %v131_v3, %v130_v2  ;;  %v126_v6 = vld [vmem:[#allocation7 + $0x8] sm:$0xff]  ;;  %v133_v8 = vld [vmem:[#allocation8 + $0x18] sm:$0xff]  ;;  %v127_v10 = vld [vmem:[#allocation7 + $0x10] sm:$0xff]  ;;  %v305_v2 = vlaneseq  ;;  %s645_s25 = sshll.u32 %s1088_s6, 4  ;;  %s646_s25 = int_to_ptr.vmem [resolvable:$true] %s645_s25 }
  0x7f   :  { %v810_v9 = vpack.c.bf16 %v126_v6, %v125_v4  ;;  %v128_v11 = vld [vmem:[#allocation7 + $0x18] sm:$0xff]  ;;  %v807_v12 = vpack.c.bf16 %v133_v8, %v132_v7  ;;  %v124_v15 = vld [vmem:[#allocation2] sm:$0xff]  ;;  %v316_v16 = vld [vmem:[#allocation10] sm:$0xff]  ;;  %s1043_s11 = scalar_lea.vmem %s646_s25, 16  ;;  %s1047_s12 = scalar_lea.vmem %s646_s25, 32 }
  0x80   :  { %805 = vmatpush3.bf16.msra.mxu1 %v804_v5  ;;  %v813_v13 = vpack.c.bf16 %v128_v11, %v127_v10  ;;  %v129_v14 = vld [vmem:[#allocation5] sm:$0xff]  ;;  %v317_v17 = vld [vmem:[#allocation10 + $0x8] sm:$0xff]  ;;  %v318_v19 = vld [vmem:[#allocation10 + $0x10] sm:$0xff]  ;;  %v306_v3 = vshrl.u32 %v305_v2, 7  ;;  %p1044_p0 = scmp.ne.s32.totalorder %s646_s25, %s1043_s11  ;;  %p1048_p1 = scmp.lt.s32.totalorder %s646_s25, %s646_s25 }
  0x81   :  { %811 = vmatpush3.bf16.msra.mxu0 %v810_v9  ;;  %806 = vmatprep.subr.bf16.mxu1 %v1084_v0  ;;  %v816_v18 = vpack.c.bf16 %v317_v17, %v316_v16  ;;  %v319_v20 = vld [vmem:[#allocation10 + $0x18] sm:$0xff]  ;;  %v320_v22 = vld [vmem:[#allocation10 + $0x20] sm:$0xff]  ;;  %v321_v23 = vld [vmem:[#allocation10 + $0x28] sm:$0xff]  ;;  %p1049_p2 = scmp.lt.s32.totalorder %s1047_s12, %s1043_s11 }
  0x82   :  { %812 = vmatprep.subr.bf16.mxu0 %v1084_v0  ;;  %v819_v21 = vpack.c.bf16 %v319_v20, %v318_v19  ;;  %v822_v24 = vpack.c.bf16 %v321_v23, %v320_v22  ;;  %v322_v25 = vld [vmem:[#allocation10 + $0x30] sm:$0xff]  ;;  %v323_v26 = vld [vmem:[#allocation10 + $0x38] sm:$0xff]  ;;  %v324_v28 = vld [vmem:[#allocation10 + $0x40] sm:$0xff]  ;;  %v1247_v5 = vsub.s32 0, %v306_v3 }
  0x83   :  { %v825_v27 = vpack.c.bf16 %v323_v26, %v322_v25  ;;  %v325_v29 = vld [vmem:[#allocation10 + $0x48] sm:$0xff]  ;;  %v326_v31 = vld [vmem:[#allocation10 + $0x50] sm:$0xff]  ;;  %v327_v32 = vld [vmem:[#allocation10 + $0x58] sm:$0xff]  ;;  %p1050_p3 = por %p1049_p2, %p1048_p1 }
  0x84   :  { %808 = vmatpush3.bf16.msra.mxu1 %v807_v12  ;;  %v828_v30 = vpack.c.bf16 %v325_v29, %v324_v28  ;;  %v831_v33 = vpack.c.bf16 %v327_v32, %v326_v31  ;;  %v328_v34 = vld [vmem:[#allocation10 + $0x60] sm:$0xff]  ;;  %v329_v35 = vld [vmem:[#allocation10 + $0x68] sm:$0xff]  ;;  %v330_v37 = vld [vmem:[#allocation10 + $0x70] sm:$0xff] }
  0x85   :  { %814 = vmatpush3.bf16.msra.mxu0 %v813_v13  ;;  %815 = vmatprep.subr.bf16.mxu1 %v1084_v0  ;;  %v834_v36 = vpack.c.bf16 %v329_v35, %v328_v34  ;;  %v331_v38 = vld [vmem:[#allocation10 + $0x78] sm:$0xff]  ;;  %v116_v4 = vld [vmem:[#allocation13] sm:$0x1]  ;;  %v117_v8 = vld [vmem:[#allocation13 + $0x1] sm:$0x1]  ;;  %p1051_p4 = pnand %p1050_p3, %p1044_p0 }
  0x86   :  { %839 = vmatprep.subr.bf16.mxu0 %v1084_v0  ;;  %v837_v39 = vpack.c.bf16 %v331_v38, %v330_v37  ;;  %v436_v16 = vld [vmem:[#allocation11] sm:$0xff]  ;;  %v437_v17 = vld [vmem:[#allocation11 + $0x8] sm:$0xff]  ;;  %v438_v19 = vld [vmem:[#allocation11 + $0x10] sm:$0xff] }
  0x87   :  { %715 = vmatmul.mubr.msk.f32.vlgmr.msra.gmra.mrb[0].mxu1 %vm134_vm1, %v129_v14  ;;  %v439_v20 = vld [vmem:[#allocation11 + $0x18] sm:$0xff]  ;;  %v440_v22 = vld [vmem:[#allocation11 + $0x20] sm:$0xff]  ;;  %v441_v23 = vld [vmem:[#allocation11 + $0x28] sm:$0xff] }
  0x88   :  { %726 = vmatmul.mubr.msk.f32.vlgmr.msra.gmra.mrb[0].mxu0 %vm134_vm1, %v124_v15  ;;  %760 = vmatprep.mubr.msk.f32.mxu1 %vm1085_vm0, %v1086_v1  ;;  %v442_v25 = vld [vmem:[#allocation11 + $0x30] sm:$0xff]  ;;  %v445_v28 = vld [vmem:[#allocation11 + $0x48] sm:$0xff]  ;;  %v447_v31 = vld [vmem:[#allocation11 + $0x58] sm:$0xff] }
  0x89   :  { %795 = vmatprep.mubr.msk.f32.mxu0 %vm1085_vm0, %v1086_v1  ;;  %817 = vmatpush3.bf16.msra.mxu1 %v816_v18  ;;  %v840_v18 = vpack.c.bf16 %v437_v17, %v436_v16  ;;  %v449_v34 = vld [vmem:[#allocation11 + $0x68] sm:$0xff]  ;;  %v451_v37 = vld [vmem:[#allocation11 + $0x78] sm:$0xff] }
  0x8a   :  { %818 = vmatprep.subr.bf16.mxu1 %v1084_v0 }
  0x8b   :  { %841 = vmatpush3.bf16.msra.mxu0 %v840_v18 }
  0x8c   :  { %842 = vmatprep.subr.bf16.mxu0 %v1084_v0 }
  0x8d   :  { %820 = vmatpush3.bf16.msra.mxu1 %v819_v21  ;;  %v843_v21 = vpack.c.bf16 %v439_v20, %v438_v19 }
  0x8e   :  { %821 = vmatprep.subr.bf16.mxu1 %v1084_v0 }
  0x8f   :  { %844 = vmatpush3.bf16.msra.mxu0 %v843_v21 }
  0x90   :  { %845 = vmatprep.subr.bf16.mxu0 %v1084_v0 }
  0x91   :  { %823 = vmatpush3.bf16.msra.mxu1 %v822_v24  ;;  %v846_v24 = vpack.c.bf16 %v441_v23, %v440_v22 }
  0x92   :  { %824 = vmatprep.subr.bf16.mxu1 %v1084_v0 }
  0x93   :  { %847 = vmatpush3.bf16.msra.mxu0 %v846_v24 }
  0x94   :  { %848 = vmatprep.subr.bf16.mxu0 %v1084_v0 }
  0x95   :  { %826 = vmatpush3.bf16.msra.mxu1 %v825_v27  ;;  %v444_v27 = vld [vmem:[#allocation11 + $0x40] sm:$0xff] }
  0x96   :  { %827 = vmatprep.subr.bf16.mxu1 %v1084_v0  ;;  %v852_v29 = vpack.c.bf16 %v445_v28, %v444_v27 }
  0x99   :  { %829 = vmatpush3.bf16.msra.mxu1 %v828_v30  ;;  %v446_v30 = vld [vmem:[#allocation11 + $0x50] sm:$0xff] }
  0x9a   :  { %830 = vmatprep.subr.bf16.mxu1 %v1084_v0  ;;  %v855_v32 = vpack.c.bf16 %v447_v31, %v446_v30  ;;  %v120_v31 = vld [vmem:[#allocation13 + $0x4] sm:$0x1] }
  0x9d   :  { %832 = vmatpush3.bf16.msra.mxu1 %v831_v33  ;;  %v448_v33 = vld [vmem:[#allocation11 + $0x60] sm:$0xff] }
  0x9e   :  { %833 = vmatprep.subr.bf16.mxu1 %v1084_v0  ;;  %v858_v35 = vpack.c.bf16 %v449_v34, %v448_v33  ;;  %v121_v34 = vld [vmem:[#allocation13 + $0x5] sm:$0x1] }
  0xa1   :  { %835 = vmatpush3.bf16.msra.mxu1 %v834_v36  ;;  %v450_v36 = vld [vmem:[#allocation11 + $0x70] sm:$0xff] }
  0xa2   :  { %836 = vmatprep.subr.bf16.mxu1 %v1084_v0  ;;  %v861_v38 = vpack.c.bf16 %v451_v37, %v450_v36 }
  0xa5   :  { %838 = vmatpush3.bf16.msra.mxu1 %v837_v39 }
  0xa6   :  { %798 = vmatprep.subr.mxu1 %v1086_v1 }
 0x15a   :  { %v204_v40 = vpop.f32.mrb[0].mxu1 }
 0x15b   :  { %v277_v41 = vpop.f32.mrb[0].mxu0  ;;  %v716_v42 = vpop.f32.mrb[1].mxu1 }
 0x15c   :  { %v278_v43 = vadd.f32 %v277_v41, %v204_v40  ;;  %v727_v44 = vpop.f32.mrb[1].mxu0 }
 0x15e   :  { %v281_v45 = vrot.slane %v278_v43, 4  ;;  %v289_v46 = vmul.f32 %v278_v43, %v278_v43 }
 0x160   :  { %v282_v47 = vadd.f32 %v281_v45, %v278_v43  ;;  %v290_v48 = vrot.slane %v289_v46, 4 }
 0x162   :  { %v283_v49 = vrot.slane %v282_v47, 2  ;;  %v291_v50 = vadd.f32 %v290_v48, %v289_v46 }
 0x164   :  { %v284_v51 = vadd.f32 %v283_v49, %v282_v47  ;;  %v292_v52 = vrot.slane %v291_v50, 2 }
 0x166   :  { %v285_v53 = vrot.slane %v284_v51, 1  ;;  %v293_v54 = vadd.f32 %v292_v52, %v291_v50 }
 0x168   :  { %v286_v55 = vadd.f32 %v285_v53, %v284_v51  ;;  %v294_v56 = vrot.slane %v293_v54, 1 }
 0x16a   :  { %v288_v57 = vmul.f32 0.125, %v286_v55  ;;  %v295_v58 = vadd.f32 %v294_v56, %v293_v54 }
 0x16c   :  { %v296_v59 = vmul.f32 0.125, %v295_v58  ;;  %v297_v60 = vmul.f32 %v288_v57, %v288_v57 }
 0x16e   :  { %v298_v61 = vsub.f32 %v296_v59, %v297_v60  ;;  %v118_v59 = vld [vmem:[#allocation13 + $0x2] sm:$0x1] }
 0x170   :  { %v299_v62 = vmax.f32 %v298_v61, 0.0 }
 0x172   :  { %v300_v63 = vadd.f32 1e-05, %v299_v62  ;;  %v119_v62 = vld [vmem:[#allocation13 + $0x3] sm:$0x1] }
 0x174   :  { %879 = vrsqrt.f32 %v300_v63 }
 0x17e   :  { %v880_v6 = vpop.eup %879 }
 0x17f   :  { %v302_v7 = vmul.f32 %v880_v6, %v116_v4 }
 0x181   :  { %v308_v9 = vrot.slane %v302_v7, %v1247_v5  ;;  %v303_v10 = vmul.f32 %v302_v7, %v288_v57 }
 0x183   :  { %v304_v11 = vsub.f32 %v117_v8, %v303_v10  ;;  %v309_v12 = vmul.f32 %v308_v9, %v278_v43  ;;  %v123_v9 = vld [vmem:[#allocation13 + $0x7] sm:$0x1]  ;;  %v1087_v10 = vmov 0  }
 0x184   :  { %878 = vset.pattern.permute.xlu0 %v1087_v10 }
 0x185   :  { %v313_v13 = vrot.slane %v304_v11, %v1247_v5  ;;  %558 = vperm.xlu0 %878, %v123_v9  }
 0x187   :  { %v314_v14 = vadd.f32 %v313_v13, %v309_v12 }
 0x189   :  { %v315_v15 = vmax.f32 %v314_v14, 0.0 }
 0x18b   :  { %761 = vmatmul.mubr.f32.vlgmr.msra.gmra.mrb[2].mxu1 %v315_v15 }
 0x18c   :  { %800 = vmatprep.mubr.msk.f32.mxu1 %vm1085_vm0, %v1086_v1  ;;  %v443_v1 = vld [vmem:[#allocation11 + $0x38] sm:$0xff] }
 0x18d   :  { %v849_v26 = vpack.c.bf16 %v443_v1, %v442_v25 }
 0x18f   :  { %850 = vmatpush3.bf16.msra.mxu0 %v849_v26 }
 0x190   :  { %851 = vmatprep.subr.bf16.mxu0 %v1084_v0 }
 0x193   :  { %853 = vmatpush3.bf16.msra.mxu0 %v852_v29 }
 0x194   :  { %854 = vmatprep.subr.bf16.mxu0 %v1084_v0 }
 0x197   :  { %856 = vmatpush3.bf16.msra.mxu0 %v855_v32 }
 0x198   :  { %857 = vmatprep.subr.bf16.mxu0 %v1084_v0 }
 0x19b   :  { %859 = vmatpush3.bf16.msra.mxu0 %v858_v35 }
 0x19c   :  { %860 = vmatprep.subr.bf16.mxu0 %v1084_v0 }
 0x19f   :  { %862 = vmatpush3.bf16.msra.mxu0 %v861_v38 }
 0x25e   :  { %v398_v39 = vpop.f32.mrb[2].mxu1 }
 0x25f   :  { %v402_v40 = vrot.slane %v398_v39, 4  ;;  %v409_v41 = vmul.f32 %v398_v39, %v398_v39  ;;  %v762_v42 = vpop.f32.mrb[3].mxu1 }
 0x260   :  { %v122_v42 = vld [vmem:[#allocation13 + $0x6] sm:$0x1] }
 0x261   :  { %v403_v43 = vadd.f32 %v402_v40, %v398_v39  ;;  %v410_v44 = vrot.slane %v409_v41, 4 }
 0x263   :  { %v404_v45 = vrot.slane %v403_v43, 2  ;;  %v411_v46 = vadd.f32 %v410_v44, %v409_v41 }
 0x265   :  { %v405_v47 = vadd.f32 %v404_v45, %v403_v43  ;;  %v412_v48 = vrot.slane %v411_v46, 2  ;;  %v559_v43 = vpop.permute.xlu0 %558 }
 0x267   :  { %v406_v49 = vrot.slane %v405_v47, 1  ;;  %v413_v50 = vadd.f32 %v412_v48, %v411_v46 }
 0x269   :  { %v407_v51 = vadd.f32 %v406_v49, %v405_v47  ;;  %v414_v52 = vrot.slane %v413_v50, 1 }
 0x26b   :  { %v408_v53 = vmul.f32 0.125, %v407_v51  ;;  %v415_v0 = vadd.f32 %v414_v52, %v413_v50 }
 0x26d   :  { %v416_v54 = vmul.f32 0.125, %v415_v0  ;;  %v417_v55 = vmul.f32 %v408_v53, %v408_v53 }
 0x26f   :  { %v418_v56 = vsub.f32 %v416_v54, %v417_v55 }
 0x271   :  { %v419_v57 = vmax.f32 %v418_v56, 0.0 }
 0x273   :  { %v420_v58 = vadd.f32 1e-05, %v419_v57 }
 0x275   :  { %881 = vrsqrt.f32 %v420_v58 }
 0x27f   :  { %v882_v60 = vpop.eup %881 }
 0x280   :  { %v422_v61 = vmul.f32 %v882_v60, %v118_v59 }
 0x282   :  { %v423_v63 = vmul.f32 %v422_v61, %v408_v53  ;;  %v428_v2 = vrot.slane %v422_v61, %v1247_v5 }
 0x284   :  { %v424_v3 = vsub.f32 %v119_v62, %v423_v63  ;;  %v429_v4 = vmul.f32 %v428_v2, %v398_v39 }
 0x286   :  { %v433_v6 = vrot.slane %v424_v3, %v1247_v5 }
 0x288   :  { %v434_v7 = vadd.f32 %v433_v6, %v429_v4 }
 0x28a   :  { %v435_v8 = vmax.f32 %v434_v7, 0.0 }
 0x28c   :  { %796 = vmatmul.mubr.f32.vlgmr.msra.gmra.mrb[2].mxu0 %v435_v8 }
 0x35f   :  { %v518_v11 = vpop.f32.mrb[2].mxu0 }
 0x360   :  { %v522_v12 = vrot.slane %v518_v11, 4  ;;  %v529_v13 = vmul.f32 %v518_v11, %v518_v11  ;;  %v797_v14 = vpop.f32.mrb[3].mxu0 }
 0x362   :  { %v523_v15 = vadd.f32 %v522_v12, %v518_v11  ;;  %v530_v16 = vrot.slane %v529_v13, 4 }
 0x364   :  { %v524_v17 = vrot.slane %v523_v15, 2  ;;  %v531_v18 = vadd.f32 %v530_v16, %v529_v13 }
 0x366   :  { %v525_v19 = vadd.f32 %v524_v17, %v523_v15  ;;  %v532_v20 = vrot.slane %v531_v18, 2 }
 0x368   :  { %v526_v21 = vrot.slane %v525_v19, 1  ;;  %v533_v22 = vadd.f32 %v532_v20, %v531_v18 }
 0x36a   :  { %v527_v23 = vadd.f32 %v526_v21, %v525_v19  ;;  %v534_v24 = vrot.slane %v533_v22, 1 }
 0x36c   :  { %v528_v25 = vmul.f32 0.125, %v527_v23  ;;  %v535_v1 = vadd.f32 %v534_v24, %v533_v22 }
 0x36e   :  { %v536_v26 = vmul.f32 0.125, %v535_v1  ;;  %v537_v27 = vmul.f32 %v528_v25, %v528_v25 }
 0x370   :  { %v538_v28 = vsub.f32 %v536_v26, %v537_v27 }
 0x372   :  { %v539_v29 = vmax.f32 %v538_v28, 0.0 }
 0x374   :  { %v540_v30 = vadd.f32 1e-05, %v539_v29 }
 0x376   :  { %883 = vrsqrt.f32 %v540_v30 }
 0x380   :  { %v884_v32 = vpop.eup %883 }
 0x381   :  { %v542_v33 = vmul.f32 %v884_v32, %v120_v31 }
 0x383   :  { %v543_v35 = vmul.f32 %v542_v33, %v528_v25  ;;  %v548_v36 = vrot.slane %v542_v33, %v1247_v5 }
 0x385   :  { %v544_v37 = vsub.f32 %v121_v34, %v543_v35  ;;  %v549_v38 = vmul.f32 %v548_v36, %v518_v11 }
 0x387   :  { %v553_v39 = vrot.slane %v544_v37, %v1247_v5 }
 0x389   :  { %v554_v40 = vadd.f32 %v553_v39, %v549_v38 }
 0x38b   :  { %v555_v41 = vmax.f32 %v554_v40, 0.0 }
 0x38d   :  { %799 = vmatpush3.xpose.msra.mxu1 %v555_v41 }
 0x390   :  { %801 = vmatmul.mubr.f32.vlgmr.msra.gmra.mrb[4].mxu1 %v122_v42 }
 0x463   :  { %v627_v44 = vpop.f32.mrb[4].mxu1 }
 0x464   :  { %v628_v45 = vadd.f32 %v627_v44, %v559_v43  ;;  %v802_v46 = vpop.f32.mrb[5].mxu1 }
 0x466   :  { %v659_v47 = vmul.f32 -1.442695, %v628_v45 }
 0x468   :  { %885 = vpow2.f32 %v659_v47 }
 0x472   :  { %v886_v48 = vpop.eup %885 }
 0x473   :  { %v634_v49 = vadd.f32 1.0, %v886_v48 }
 0x475   :  { %887 = vrcp.f32 %v634_v49 }
 0x47f   :  { %v888_v50 = vpop.eup %887 }
 0x480   :  { %638 = vst.msk [vmem:[#allocation14] sm:$0x1] %vm637_vm2, %v888_v50 }
 0x481   :  { %1054 = shalt.err (!%p1051_p4)
}
 0x482   :  { %s1055_s13 = scalar_lea.hbm %s1283_s7, 16 }
 0x483   :  { %p1056_p5 = scmp.ne.s32.totalorder %s1283_s7, %s1055_s13  ;;  %p1059_p6 = scmp.lt.u32.totalorder %s1055_s13, %s1283_s7 }
 0x485   :  { %p1061_p7 = pnand %p1059_p6, %p1056_p5 }
 0x487   :  { %1064 = shalt.err (!%p1061_p7)
}
 0x488   :  { %648 = dma.vmem_to_hbm [thread:$0]  %s646_s25, 16, %s1283_s7, [#allocation4]  }
 0x489   :  { %1073 = dma.done.wait [#allocation4], 16  }
 0x48a   :  { %1074 = vsyncadd [#allocation4], 4294967280 }
 0x48b   :  { %652 = vsyncpa [#allocation3], 1 }
 0x48c   :  { %653 = vsyncpa [#allocation6], 1 }
 0x48d   :  { %654 = vsyncpa [#allocation9], 1 }
 0x48e   :  { %655 = vsyncpa [#allocation12], 1 }
 0x48f   :  { %656 = vsyncpa [#allocation4], 1 }

</bundles_post_ra>
